<compile_context>
chip_gen: v6e
topology: v6e:2x2x1
jax: 0.10.0
libtpu: 0.0.40
codegen_flags: <defaults>
</compile_context>

<pallas_src>
import jax
import jax.numpy as jnp
import numpy as np
from jax.experimental import pallas as pl
from jax.experimental.pallas import tpu as pltpu

KH = KW = 3   # conv kernel
PAD = 2       # conv padding
POOL = 2      # max-pool window / stride


def _round_up(x, m):
    return (x + m - 1) // m * m


def _make_kernel(nb, cin, cout, wp, mcols, njpad):
    """Build the kernel body with the static geometry baked in via closure."""
    taps = KH * KW

    def kernel(x_ref, w_ref, b_ref, o_ref, rhs_ref):
        # x_ref:   (NB, Cin, FLAT)        zero-padded, row-flattened images
        # w_ref:   (Cout, KH*KW*Cin)      tap-stacked conv weights
        # b_ref:   (Cout, 1)              bias
        # o_ref:   (NB, Cout, NJPAD)      lane-dense pooled slabs
        # rhs_ref: (KH*KW*Cin, NB*MCOLS)  scratch: stacked matmul RHS

        # ---- single staging pass: stack the 9 shifted tap slices per image ----
        # rhs[(kh*KW+kw)*Cin + ci, b*MCOLS + m] = xflat[b, ci, m + kh*Wp + kw]
        for b in range(nb):
            for t in range(taps):
                kh, kw_ = divmod(t, KW)
                off = kh * wp + kw_
                rhs_ref[pl.ds(t * cin, cin), pl.ds(b * mcols, mcols)] = (
                    x_ref[b, :, pl.ds(off, mcols)])

        # ---- Conv2d for all taps / channels / images: ONE MXU matmul ----
        acc = jnp.dot(w_ref[...], rhs_ref[...],
                      preferred_element_type=jnp.float32)      # (Cout, NB*MCOLS)

        # ---- bias + ReLU, kept in vregs ----
        act = jnp.maximum(acc + b_ref[...], 0.0)

        # ---- 2x2 max pool (stride 2, floor) on the flattened layout ----
        # conv rows r and r+1 differ by Wp in the flat index, cols by 1.
        for b in range(nb):
            a = act[:, b * mcols:(b + 1) * mcols]               # (Cout, MCOLS)
            p = jnp.maximum(
                jnp.maximum(a[:, 0:njpad], a[:, 1:njpad + 1]),
                jnp.maximum(a[:, wp:wp + njpad], a[:, wp + 1:wp + 1 + njpad]))
            o_ref[b] = p                                        # lane-dense store

    return kernel


def block_forward(x, w, b, *, nb=2):
    """x: (N, Cin, H, W) f32; w: (Cout, Cin, 3, 3) f32; b: (Cout,) f32."""
    n, cin, h, wd = x.shape
    cout = w.shape[0]
    hp, wp = h + 2 * PAD, wd + 2 * PAD
    hc, wc = hp - KH + 1, wp - KW + 1             # conv output size (H+2, W+2)
    ho, wo = hc // POOL, wc // POOL               # pooled output size

    njpad = _round_up(hc * wp, 128)               # lane-dense pooled slab width
    mcols = _round_up(njpad + wp + 1, 128)        # conv columns computed
    flat = _round_up((KH - 1) * wp + (KW - 1) + mcols, 128)   # padded slab width

    if n % nb != 0:
        nb = 1

    # Wrapper-side layout plumbing: zero-pad spatially, flatten, pad the tail
    # so every shifted tap slice stays inside zeroed bounds.
    xpad = jnp.pad(x, ((0, 0), (0, 0), (PAD, PAD), (PAD, PAD)))
    xflat = jnp.pad(xpad.reshape(n, cin, hp * wp),
                    ((0, 0), (0, 0), (0, flat - hp * wp)))

    # Tap-stacked weights: wmat[co, (kh*KW+kw)*Cin + ci] == w[co, ci, kh, kw]
    wmat = jnp.transpose(w, (0, 2, 3, 1)).reshape(cout, KH * KW * cin)
    b2 = b.reshape(cout, 1)

    kernel = _make_kernel(nb, cin, cout, wp, mcols, njpad)

    out_slab = pl.pallas_call(
        kernel,
        out_shape=jax.ShapeDtypeStruct((n, cout, njpad), jnp.float32),
        grid_spec=pltpu.PrefetchScalarGridSpec(
            num_scalar_prefetch=0,
            grid=(n // nb,),
            in_specs=[
                pl.BlockSpec((nb, cin, flat), lambda i: (i, 0, 0)),
                pl.BlockSpec((cout, KH * KW * cin), lambda i: (0, 0)),
                pl.BlockSpec((cout, 1), lambda i: (0, 0)),
            ],
            out_specs=pl.BlockSpec((nb, cout, njpad), lambda i: (i, 0, 0)),
            scratch_shapes=[pltpu.VMEM((KH * KW * cin, nb * mcols), jnp.float32)],
        ),
        compiler_params=pltpu.CompilerParams(
            dimension_semantics=("parallel",)),
    )(xflat, wmat, b2)

    # Select the valid pooled entries -> NCHW (pure layout plumbing in XLA).
    out4 = out_slab[:, :, :hc * wp].reshape(n, cout, hc, wp)
    return out4[:, :, :ho * POOL:POOL, :wo * POOL:POOL]


def block_reference(x, w, b):
    """Pure-JAX reference matching torch semantics (NCHW, zero pad, floor pool)."""
    conv = jax.lax.conv_general_dilated(
        x, w, window_strides=(1, 1),
        padding=((PAD, PAD), (PAD, PAD)),
        dimension_numbers=("NCHW", "OIHW", "NCHW"))
    conv = conv + b.reshape(1, -1, 1, 1)
    act = jnp.maximum(conv, 0.0)
    return jax.lax.reduce_window(
        act, -jnp.inf, jax.lax.max,
        window_dimensions=(1, 1, POOL, POOL),
        window_strides=(1, 1, POOL, POOL),
        padding="VALID")


if __name__ == "__main__":
    batch, in_channels, out_channels, H, W = 2, 4, 8, 16, 16

    key = jax.random.PRNGKey(0)
    kx, kw, kb = jax.random.split(key, 3)

    x = jax.random.normal(kx, (batch, in_channels, H, W), dtype=jnp.float32)
    # Deterministic parameter init (stand-in for torch's kaiming uniform).
    fan_in = in_channels * KH * KW
    bound = 1.0 / np.sqrt(fan_in)
    weight = jax.random.uniform(kw, (out_channels, in_channels, KH, KW),
                                minval=-bound, maxval=bound, dtype=jnp.float32)
    bias = jax.random.uniform(kb, (out_channels,),
                              minval=-bound, maxval=bound, dtype=jnp.float32)

    out = jax.block_until_ready(block_forward(x, weight, bias))
    ref = jax.block_until_ready(block_reference(x, weight, bias))

    assert out.shape == (batch, out_channels, (H + 2) // 2, (W + 2) // 2), out.shape
    np.testing.assert_allclose(np.asarray(out), np.asarray(ref),
                               rtol=1e-5, atol=1e-5)
    print("KERNEL_OK")
</pallas_src>

<mosaic_0001>
module attributes {stable_mosaic.version = 11 : i64} {
  func.func @kernel(%arg0: i32, %arg1: memref<2x4x640xf32, #tpu.memory_space<vmem>>, %arg2: memref<8x36xf32, #tpu.memory_space<vmem>>, %arg3: memref<8x1xf32, #tpu.memory_space<vmem>>, %arg4: memref<2x8x384xf32, #tpu.memory_space<vmem>>, %arg5: memref<36x1024xf32, #tpu.memory_space<vmem>>) attributes {dimension_semantics = [#tpu.dimension_semantics<parallel>], iteration_bounds = array<i64: 1>, scalar_prefetch = 0 : i64, scratch_operands = 1 : i64, tpu.core_type = #tpu.core_type<tc>, window_params = [{transform_indices = @transform_0, window_bounds = array<i64: 2, 4, 640>}, {pipeline_mode = #tpu.pipeline_mode<synchronous>, transform_indices = @transform_1, window_bounds = array<i64: 8, 36>}, {pipeline_mode = #tpu.pipeline_mode<synchronous>, transform_indices = @transform_2, window_bounds = array<i64: 8, 1>}, {transform_indices = @transform_3, window_bounds = array<i64: 2, 8, 384>}]} {
    %c0 = arith.constant 0 : index
    %c0_0 = arith.constant 0 : index
    %c0_1 = arith.constant 0 : index
    %0 = vector.load %arg1[%c0, %c0_0, %c0_1] : memref<2x4x640xf32, #tpu.memory_space<vmem>>, vector<1x4x512xf32>
    %1 = vector.shape_cast %0 : vector<1x4x512xf32> to vector<4x512xf32>
    %c0_2 = arith.constant 0 : index
    %c0_3 = arith.constant 0 : index
    %2 = vector.load %arg5[%c0_2, %c0_3] : memref<36x1024xf32, #tpu.memory_space<vmem>>, vector<4x512xf32>
    tpu.vector_store %arg5[%c0_2, %c0_3], %1 {strides = array<i32>} : memref<36x1024xf32, #tpu.memory_space<vmem>>, vector<4x512xf32>,
    %c0_4 = arith.constant 0 : index
    %c0_5 = arith.constant 0 : index
    %c1 = arith.constant 1 : index
    %3 = vector.load %arg1[%c0_4, %c0_5, %c1] : memref<2x4x640xf32, #tpu.memory_space<vmem>>, vector<1x4x512xf32>
    %4 = vector.shape_cast %3 : vector<1x4x512xf32> to vector<4x512xf32>
    %c4 = arith.constant 4 : index
    %c0_6 = arith.constant 0 : index
    %5 = vector.load %arg5[%c4, %c0_6] : memref<36x1024xf32, #tpu.memory_space<vmem>>, vector<4x512xf32>
    tpu.vector_store %arg5[%c4, %c0_6], %4 {strides = array<i32>} : memref<36x1024xf32, #tpu.memory_space<vmem>>, vector<4x512xf32>,
    %c0_7 = arith.constant 0 : index
    %c0_8 = arith.constant 0 : index
    %c2 = arith.constant 2 : index
    %6 = vector.load %arg1[%c0_7, %c0_8, %c2] : memref<2x4x640xf32, #tpu.memory_space<vmem>>, vector<1x4x512xf32>
    %7 = vector.shape_cast %6 : vector<1x4x512xf32> to vector<4x512xf32>
    %c8 = arith.constant 8 : index
    %c0_9 = arith.constant 0 : index
    %8 = vector.load %arg5[%c8, %c0_9] : memref<36x1024xf32, #tpu.memory_space<vmem>>, vector<4x512xf32>
    tpu.vector_store %arg5[%c8, %c0_9], %7 {strides = array<i32>} : memref<36x1024xf32, #tpu.memory_space<vmem>>, vector<4x512xf32>,
    %c0_10 = arith.constant 0 : index
    %c0_11 = arith.constant 0 : index
    %c20 = arith.constant 20 : index
    %9 = vector.load %arg1[%c0_10, %c0_11, %c20] : memref<2x4x640xf32, #tpu.memory_space<vmem>>, vector<1x4x512xf32>
    %10 = vector.shape_cast %9 : vector<1x4x512xf32> to vector<4x512xf32>
    %c12 = arith.constant 12 : index
    %c0_12 = arith.constant 0 : index
    %11 = vector.load %arg5[%c12, %c0_12] : memref<36x1024xf32, #tpu.memory_space<vmem>>, vector<4x512xf32>
    tpu.vector_store %arg5[%c12, %c0_12], %10 {strides = array<i32>} : memref<36x1024xf32, #tpu.memory_space<vmem>>, vector<4x512xf32>,
    %c0_13 = arith.constant 0 : index
    %c0_14 = arith.constant 0 : index
    %c21 = arith.constant 21 : index
    %12 = vector.load %arg1[%c0_13, %c0_14, %c21] : memref<2x4x640xf32, #tpu.memory_space<vmem>>, vector<1x4x512xf32>
    %13 = vector.shape_cast %12 : vector<1x4x512xf32> to vector<4x512xf32>
    %c16 = arith.constant 16 : index
    %c0_15 = arith.constant 0 : index
    %14 = vector.load %arg5[%c16, %c0_15] : memref<36x1024xf32, #tpu.memory_space<vmem>>, vector<4x512xf32>
    tpu.vector_store %arg5[%c16, %c0_15], %13 {strides = array<i32>} : memref<36x1024xf32, #tpu.memory_space<vmem>>, vector<4x512xf32>,
    %c0_16 = arith.constant 0 : index
    %c0_17 = arith.constant 0 : index
    %c22 = arith.constant 22 : index
    %15 = vector.load %arg1[%c0_16, %c0_17, %c22] : memref<2x4x640xf32, #tpu.memory_space<vmem>>, vector<1x4x512xf32>
    %16 = vector.shape_cast %15 : vector<1x4x512xf32> to vector<4x512xf32>
    %c20_18 = arith.constant 20 : index
    %c0_19 = arith.constant 0 : index
    %17 = vector.load %arg5[%c20_18, %c0_19] : memref<36x1024xf32, #tpu.memory_space<vmem>>, vector<4x512xf32>
    tpu.vector_store %arg5[%c20_18, %c0_19], %16 {strides = array<i32>} : memref<36x1024xf32, #tpu.memory_space<vmem>>, vector<4x512xf32>,
    %c0_20 = arith.constant 0 : index
    %c0_21 = arith.constant 0 : index
    %c40 = arith.constant 40 : index
    %18 = vector.load %arg1[%c0_20, %c0_21, %c40] : memref<2x4x640xf32, #tpu.memory_space<vmem>>, vector<1x4x512xf32>
    %19 = vector.shape_cast %18 : vector<1x4x512xf32> to vector<4x512xf32>
    %c24 = arith.constant 24 : index
    %c0_22 = arith.constant 0 : index
    %20 = vector.load %arg5[%c24, %c0_22] : memref<36x1024xf32, #tpu.memory_space<vmem>>, vector<4x512xf32>
    tpu.vector_store %arg5[%c24, %c0_22], %19 {strides = array<i32>} : memref<36x1024xf32, #tpu.memory_space<vmem>>, vector<4x512xf32>,
    %c0_23 = arith.constant 0 : index
    %c0_24 = arith.constant 0 : index
    %c41 = arith.constant 41 : index
    %21 = vector.load %arg1[%c0_23, %c0_24, %c41] : memref<2x4x640xf32, #tpu.memory_space<vmem>>, vector<1x4x512xf32>
    %22 = vector.shape_cast %21 : vector<1x4x512xf32> to vector<4x512xf32>
    %c28 = arith.constant 28 : index
    %c0_25 = arith.constant 0 : index
    %23 = vector.load %arg5[%c28, %c0_25] : memref<36x1024xf32, #tpu.memory_space<vmem>>, vector<4x512xf32>
    tpu.vector_store %arg5[%c28, %c0_25], %22 {strides = array<i32>} : memref<36x1024xf32, #tpu.memory_space<vmem>>, vector<4x512xf32>,
    %c0_26 = arith.constant 0 : index
    %c0_27 = arith.constant 0 : index
    %c42 = arith.constant 42 : index
    %24 = vector.load %arg1[%c0_26, %c0_27, %c42] : memref<2x4x640xf32, #tpu.memory_space<vmem>>, vector<1x4x512xf32>
    %25 = vector.shape_cast %24 : vector<1x4x512xf32> to vector<4x512xf32>
    %c32 = arith.constant 32 : index
    %c0_28 = arith.constant 0 : index
    %26 = vector.load %arg5[%c32, %c0_28] : memref<36x1024xf32, #tpu.memory_space<vmem>>, vector<4x512xf32>
    tpu.vector_store %arg5[%c32, %c0_28], %25 {strides = array<i32>} : memref<36x1024xf32, #tpu.memory_space<vmem>>, vector<4x512xf32>,
    %c1_29 = arith.constant 1 : index
    %c0_30 = arith.constant 0 : index
    %c0_31 = arith.constant 0 : index
    %27 = vector.load %arg1[%c1_29, %c0_30, %c0_31] : memref<2x4x640xf32, #tpu.memory_space<vmem>>, vector<1x4x512xf32>
    %28 = vector.shape_cast %27 : vector<1x4x512xf32> to vector<4x512xf32>
    %c0_32 = arith.constant 0 : index
    %c512 = arith.constant 512 : index
    %29 = vector.load %arg5[%c0_32, %c512] : memref<36x1024xf32, #tpu.memory_space<vmem>>, vector<4x512xf32>
    tpu.vector_store %arg5[%c0_32, %c512], %28 {strides = array<i32>} : memref<36x1024xf32, #tpu.memory_space<vmem>>, vector<4x512xf32>,
    %c1_33 = arith.constant 1 : index
    %c0_34 = arith.constant 0 : index
    %c1_35 = arith.constant 1 : index
    %30 = vector.load %arg1[%c1_33, %c0_34, %c1_35] : memref<2x4x640xf32, #tpu.memory_space<vmem>>, vector<1x4x512xf32>
    %31 = vector.shape_cast %30 : vector<1x4x512xf32> to vector<4x512xf32>
    %c4_36 = arith.constant 4 : index
    %c512_37 = arith.constant 512 : index
    %32 = vector.load %arg5[%c4_36, %c512_37] : memref<36x1024xf32, #tpu.memory_space<vmem>>, vector<4x512xf32>
    tpu.vector_store %arg5[%c4_36, %c512_37], %31 {strides = array<i32>} : memref<36x1024xf32, #tpu.memory_space<vmem>>, vector<4x512xf32>,
    %c1_38 = arith.constant 1 : index
    %c0_39 = arith.constant 0 : index
    %c2_40 = arith.constant 2 : index
    %33 = vector.load %arg1[%c1_38, %c0_39, %c2_40] : memref<2x4x640xf32, #tpu.memory_space<vmem>>, vector<1x4x512xf32>
    %34 = vector.shape_cast %33 : vector<1x4x512xf32> to vector<4x512xf32>
    %c8_41 = arith.constant 8 : index
    %c512_42 = arith.constant 512 : index
    %35 = vector.load %arg5[%c8_41, %c512_42] : memref<36x1024xf32, #tpu.memory_space<vmem>>, vector<4x512xf32>
    tpu.vector_store %arg5[%c8_41, %c512_42], %34 {strides = array<i32>} : memref<36x1024xf32, #tpu.memory_space<vmem>>, vector<4x512xf32>,
    %c1_43 = arith.constant 1 : index
    %c0_44 = arith.constant 0 : index
    %c20_45 = arith.constant 20 : index
    %36 = vector.load %arg1[%c1_43, %c0_44, %c20_45] : memref<2x4x640xf32, #tpu.memory_space<vmem>>, vector<1x4x512xf32>
    %37 = vector.shape_cast %36 : vector<1x4x512xf32> to vector<4x512xf32>
    %c12_46 = arith.constant 12 : index
    %c512_47 = arith.constant 512 : index
    %38 = vector.load %arg5[%c12_46, %c512_47] : memref<36x1024xf32, #tpu.memory_space<vmem>>, vector<4x512xf32>
    tpu.vector_store %arg5[%c12_46, %c512_47], %37 {strides = array<i32>} : memref<36x1024xf32, #tpu.memory_space<vmem>>, vector<4x512xf32>,
    %c1_48 = arith.constant 1 : index
    %c0_49 = arith.constant 0 : index
    %c21_50 = arith.constant 21 : index
    %39 = vector.load %arg1[%c1_48, %c0_49, %c21_50] : memref<2x4x640xf32, #tpu.memory_space<vmem>>, vector<1x4x512xf32>
    %40 = vector.shape_cast %39 : vector<1x4x512xf32> to vector<4x512xf32>
    %c16_51 = arith.constant 16 : index
    %c512_52 = arith.constant 512 : index
    %41 = vector.load %arg5[%c16_51, %c512_52] : memref<36x1024xf32, #tpu.memory_space<vmem>>, vector<4x512xf32>
    tpu.vector_store %arg5[%c16_51, %c512_52], %40 {strides = array<i32>} : memref<36x1024xf32, #tpu.memory_space<vmem>>, vector<4x512xf32>,
    %c1_53 = arith.constant 1 : index
    %c0_54 = arith.constant 0 : index
    %c22_55 = arith.constant 22 : index
    %42 = vector.load %arg1[%c1_53, %c0_54, %c22_55] : memref<2x4x640xf32, #tpu.memory_space<vmem>>, vector<1x4x512xf32>
    %43 = vector.shape_cast %42 : vector<1x4x512xf32> to vector<4x512xf32>
    %c20_56 = arith.constant 20 : index
    %c512_57 = arith.constant 512 : index
    %44 = vector.load %arg5[%c20_56, %c512_57] : memref<36x1024xf32, #tpu.memory_space<vmem>>, vector<4x512xf32>
    tpu.vector_store %arg5[%c20_56, %c512_57], %43 {strides = array<i32>} : memref<36x1024xf32, #tpu.memory_space<vmem>>, vector<4x512xf32>,
    %c1_58 = arith.constant 1 : index
    %c0_59 = arith.constant 0 : index
    %c40_60 = arith.constant 40 : index
    %45 = vector.load %arg1[%c1_58, %c0_59, %c40_60] : memref<2x4x640xf32, #tpu.memory_space<vmem>>, vector<1x4x512xf32>
    %46 = vector.shape_cast %45 : vector<1x4x512xf32> to vector<4x512xf32>
    %c24_61 = arith.constant 24 : index
    %c512_62 = arith.constant 512 : index
    %47 = vector.load %arg5[%c24_61, %c512_62] : memref<36x1024xf32, #tpu.memory_space<vmem>>, vector<4x512xf32>
    tpu.vector_store %arg5[%c24_61, %c512_62], %46 {strides = array<i32>} : memref<36x1024xf32, #tpu.memory_space<vmem>>, vector<4x512xf32>,
    %c1_63 = arith.constant 1 : index
    %c0_64 = arith.constant 0 : index
    %c41_65 = arith.constant 41 : index
    %48 = vector.load %arg1[%c1_63, %c0_64, %c41_65] : memref<2x4x640xf32, #tpu.memory_space<vmem>>, vector<1x4x512xf32>
    %49 = vector.shape_cast %48 : vector<1x4x512xf32> to vector<4x512xf32>
    %c28_66 = arith.constant 28 : index
    %c512_67 = arith.constant 512 : index
    %50 = vector.load %arg5[%c28_66, %c512_67] : memref<36x1024xf32, #tpu.memory_space<vmem>>, vector<4x512xf32>
    tpu.vector_store %arg5[%c28_66, %c512_67], %49 {strides = array<i32>} : memref<36x1024xf32, #tpu.memory_space<vmem>>, vector<4x512xf32>,
    %c1_68 = arith.constant 1 : index
    %c0_69 = arith.constant 0 : index
    %c42_70 = arith.constant 42 : index
    %51 = vector.load %arg1[%c1_68, %c0_69, %c42_70] : memref<2x4x640xf32, #tpu.memory_space<vmem>>, vector<1x4x512xf32>
    %52 = vector.shape_cast %51 : vector<1x4x512xf32> to vector<4x512xf32>
    %c32_71 = arith.constant 32 : index
    %c512_72 = arith.constant 512 : index
    %53 = vector.load %arg5[%c32_71, %c512_72] : memref<36x1024xf32, #tpu.memory_space<vmem>>, vector<4x512xf32>
    tpu.vector_store %arg5[%c32_71, %c512_72], %52 {strides = array<i32>} : memref<36x1024xf32, #tpu.memory_space<vmem>>, vector<4x512xf32>,
    %c0_73 = arith.constant 0 : index
    %c0_74 = arith.constant 0 : index
    %54 = vector.load %arg2[%c0_73, %c0_74] : memref<8x36xf32, #tpu.memory_space<vmem>>, vector<8x36xf32>
    %c0_75 = arith.constant 0 : index
    %c0_76 = arith.constant 0 : index
    %55 = vector.load %arg5[%c0_75, %c0_76] : memref<36x1024xf32, #tpu.memory_space<vmem>>, vector<36x1024xf32>
    %cst = arith.constant dense<0.000000e+00> : vector<8x1024xf32>
    %56 = tpu.matmul %54, %55, %cst {dimension_numbers = #tpu.dot_dimension_numbers<[1], [0], [0], [1], [0, 0, 1, 1], [], []>} : vector<8x36xf32>, vector<36x1024xf32>, vector<8x1024xf32> -> vector<8x1024xf32>
    %c0_77 = arith.constant 0 : index
    %c0_78 = arith.constant 0 : index
    %57 = vector.load %arg3[%c0_77, %c0_78] : memref<8x1xf32, #tpu.memory_space<vmem>>, vector<8x1xf32>
    %58 = vector.broadcast %57 : vector<8x1xf32> to vector<8x1024xf32>
    %59 = arith.addf %56, %58 : vector<8x1024xf32>
    %cst_79 = arith.constant 0.000000e+00 : f32
    %60 = vector.broadcast %cst_79 : f32 to vector<8x1024xf32>
    %61 = arith.maximumf %59, %60 : vector<8x1024xf32>
    %62 = vector.extract_strided_slice %61 {offsets = [0, 0], sizes = [8, 512], strides = [1, 1]} : vector<8x1024xf32> to vector<8x512xf32>
    %63 = vector.extract_strided_slice %62 {offsets = [0, 0], sizes = [8, 384], strides = [1, 1]} : vector<8x512xf32> to vector<8x384xf32>
    %64 = vector.extract_strided_slice %62 {offsets = [0, 1], sizes = [8, 384], strides = [1, 1]} : vector<8x512xf32> to vector<8x384xf32>
    %65 = arith.maximumf %63, %64 : vector<8x384xf32>
    %66 = vector.extract_strided_slice %62 {offsets = [0, 20], sizes = [8, 384], strides = [1, 1]} : vector<8x512xf32> to vector<8x384xf32>
    %67 = vector.extract_strided_slice %62 {offsets = [0, 21], sizes = [8, 384], strides = [1, 1]} : vector<8x512xf32> to vector<8x384xf32>
    %68 = arith.maximumf %66, %67 : vector<8x384xf32>
    %69 = arith.maximumf %65, %68 : vector<8x384xf32>
    %c0_80 = arith.constant 0 : index
    %c0_81 = arith.constant 0 : index
    %c0_82 = arith.constant 0 : index
    %70 = vector.load %arg4[%c0_80, %c0_81, %c0_82] : memref<2x8x384xf32, #tpu.memory_space<vmem>>, vector<1x8x384xf32>
    %71 = vector.shape_cast %70 : vector<1x8x384xf32> to vector<8x384xf32>
    %72 = vector.shape_cast %69 : vector<8x384xf32> to vector<1x8x384xf32>
    tpu.vector_store %arg4[%c0_80, %c0_81, %c0_82], %72 {strides = array<i32>} : memref<2x8x384xf32, #tpu.memory_space<vmem>>, vector<1x8x384xf32>,
    %73 = vector.extract_strided_slice %61 {offsets = [0, 512], sizes = [8, 512], strides = [1, 1]} : vector<8x1024xf32> to vector<8x512xf32>
    %74 = vector.extract_strided_slice %73 {offsets = [0, 0], sizes = [8, 384], strides = [1, 1]} : vector<8x512xf32> to vector<8x384xf32>
    %75 = vector.extract_strided_slice %73 {offsets = [0, 1], sizes = [8, 384], strides = [1, 1]} : vector<8x512xf32> to vector<8x384xf32>
    %76 = arith.maximumf %74, %75 : vector<8x384xf32>
    %77 = vector.extract_strided_slice %73 {offsets = [0, 20], sizes = [8, 384], strides = [1, 1]} : vector<8x512xf32> to vector<8x384xf32>
    %78 = vector.extract_strided_slice %73 {offsets = [0, 21], sizes = [8, 384], strides = [1, 1]} : vector<8x512xf32> to vector<8x384xf32>
    %79 = arith.maximumf %77, %78 : vector<8x384xf32>
    %80 = arith.maximumf %76, %79 : vector<8x384xf32>
    %c1_83 = arith.constant 1 : index
    %c0_84 = arith.constant 0 : index
    %c0_85 = arith.constant 0 : index
    %81 = vector.load %arg4[%c1_83, %c0_84, %c0_85] : memref<2x8x384xf32, #tpu.memory_space<vmem>>, vector<1x8x384xf32>
    %82 = vector.shape_cast %81 : vector<1x8x384xf32> to vector<8x384xf32>
    %83 = vector.shape_cast %80 : vector<8x384xf32> to vector<1x8x384xf32>
    tpu.vector_store %arg4[%c1_83, %c0_84, %c0_85], %83 {strides = array<i32>} : memref<2x8x384xf32, #tpu.memory_space<vmem>>, vector<1x8x384xf32>,
    return
  }
  func.func @transform_0(%arg0: i32) -> (i32, i32, i32) {
    %c0_i32 = arith.constant 0 : i32
    %c0_i32_0 = arith.constant 0 : i32
    %c0_i32_1 = arith.constant 0 : i32
    return %arg0, %c0_i32, %c0_i32_0 : i32, i32, i32
  }
  func.func @transform_1(%arg0: i32) -> (i32, i32) {
    %c0_i32 = arith.constant 0 : i32
    %c0_i32_0 = arith.constant 0 : i32
    %c0_i32_1 = arith.constant 0 : i32
    return %c0_i32, %c0_i32_0 : i32, i32
  }
  func.func @transform_2(%arg0: i32) -> (i32, i32) {
    %c0_i32 = arith.constant 0 : i32
    %c0_i32_0 = arith.constant 0 : i32
    %c0_i32_1 = arith.constant 0 : i32
    return %c0_i32, %c0_i32_0 : i32, i32
  }
  func.func @transform_3(%arg0: i32) -> (i32, i32, i32) {
    %c0_i32 = arith.constant 0 : i32
    %c0_i32_0 = arith.constant 0 : i32
    %c0_i32_1 = arith.constant 0 : i32
    return %arg0, %c0_i32, %c0_i32_0 : i32, i32, i32
  }
}

</mosaic_0001>

<bundles_post_ra>
// kernel: tpu_custom_call.1
= control target key start
LH: loop header
LB: loop body
LE: loop exit
PB: predicated region body
PF: predicated region fallthrough
CT: control target
= control target key end

     0   :  { %8 = vsyncpa [#allocation4], 0  ;;  %s1447_s0 = inlined_call_operand.hbm [shape: f32[2,4,640], index: 0, kind: input, shape index: {}]   ;;  %s1448_s1 = inlined_call_operand.vmem [shape: f32[8,36], index: 1, kind: input, shape index: {}]   ;;  %s1449_s2 = inlined_call_operand.vmem [shape: f32[8,1], index: 2, kind: input, shape index: {}]   ;;  %s1450_s3 = inlined_call_operand.hbm [shape: f32[2,8,384], index: 3, kind: output, shape index: {}]  }
   0x1   :  { %9 = vsyncpa [#allocation5], 0  ;;  %s1119_s12 = smov [#allocation3]  }
   0x2   :  { %s15_s13 = sshll.u32 %s1119_s12, 4  ;;  %s16_s13 = int_to_ptr.vmem [resolvable:$true] %s15_s13 }
   0x3   :  { %s1083_s14 = scalar_lea.vmem %s16_s13, 640  ;;  %p1088_p1 = scmp.lt.s32.totalorder %s16_s13, %s16_s13 }
   0x4   :  { %p1084_p0 = scmp.ne.s32.totalorder %s16_s13, %s1083_s14  ;;  %p1089_p2 = scmp.lt.s32.totalorder %s1083_s14, %s1083_s14 }
   0x6   :  { %p1090_p3 = por %p1089_p2, %p1088_p1 }
   0x8   :  { %p1091_p4 = pnand %p1090_p3, %p1084_p0 }
   0xa   :  { %1094 = shalt.err (!%p1091_p4)
}
   0xb   :  { %s1120_s15 = smov 320   ;;  %s1121_s16 = smov 20  }
   0xc   :  { %21 = dma.hbm_to_vmem [thread:$0]  %s1447_s0, 640, %s16_s13, [#allocation4], %s1120_s15, %s1120_s15, %s1121_s16  }
   0xd   :  { %1115 = dma.done.wait [#allocation4], 640  }
   0xe   :  { %1116 = vsyncadd [#allocation4], 4294966656  ;;  %v264_v0 = vld [vmem:[#allocation3 + $0x10] sm:$0xf]  ;;  %v1158_v1 = vld [vmem:[#allocation3 + $0x8] sm:$0xff]  ;;  %s1122_s19 = smov 86  }
   0xf   :  { %v1160_v2 = vld [vmem:[#allocation3] sm:$0xff]  ;;  %278 = vrot.lane.b32.xlu1 %v264_v0, %s1122_s19  ;;  %274 = vrot.lane.b32.xlu0 %v1158_v1, %s1122_s19  ;;  %v269_v3 = vcombine.high %v1158_v1, %v1158_v1  ;;  %39 = vst [vmem:[#allocation2 + $0x10] sm:$0xf] %v1158_v1  ;;  %v1171_v5 = vld [vmem:[#allocation3 + $0x14] sm:$0xff]  ;;  %s1123_s0 = smov 88   ;;  %s1124_s20 = smov 87   ;;  %v237_v10 = vcombine.low %v1158_v1, %v1158_v1 }
  0x10   :  { %v268_v4 = vcombine.high %v1160_v2, %v1160_v2  ;;  %37 = vst [vmem:[#allocation2 + $0x30] sm:$0xf] %v1160_v2  ;;  %v1178_v6 = vcombine.high %v1171_v5, %v1171_v5  ;;  %v1180_v7 = vld [vmem:[#allocation3 + $0x1c] sm:$0xff]  ;;  %302 = vst [vmem:[#allocation2 + $0x28] sm:$0xf] %v1171_v5  ;;  %v236_v12 = vcombine.low %v1160_v2, %v1160_v2  ;;  %s1125_s21 = smov 107  }
  0x11   :  { %40 = vst [vmem:[#allocation2 + $0x88] sm:$0xf] %v269_v3  ;;  %v1185_v8 = vcombine.high %v1180_v7, %v1180_v7  ;;  %304 = vst [vmem:[#allocation2 + $0xa0] sm:$0xf] %v1180_v7  ;;  %v201_v9 = vld [vmem:[#allocation3 + $0x10] sm:$0xf]  ;;  %v1266_v21 = vcombine.low %v1180_v7, %v1180_v7  ;;  %v1274_v23 = vcombine.low %v1171_v5, %v1171_v5 }
  0x12   :  { %38 = vst [vmem:[#allocation2 + $0x70] sm:$0xf] %v268_v4  ;;  %303 = vst [vmem:[#allocation2 + $0x110] sm:$0xf] %v1178_v6  ;;  %v1063_v11 = vld [vmem:[#allocation3 + $0x10] ss:$0 sps:$4 sm:$0xff]  }
  0x13   :  { %276 = vrot.lane.b32.xlu1 %v269_v3, %s1122_s19  ;;  %270 = vrot.lane.b32.xlu0 %v1160_v2, %s1122_s19  ;;  %305 = vst [vmem:[#allocation2 + $0x108] sm:$0xf] %v1185_v8  ;;  %v138_v13 = vld [vmem:[#allocation3 + $0x10] sm:$0xf]  ;;  %s1126_s22 = smov 106   ;;  %s1127_s23 = smov 126  }
  0x14   :  { %v1064_v14 = vld [vmem:[#allocation3 + $0x10] ss:$0 sps:$4 sm:$0xff]   ;;  %s1128_s24 = smov 108   ;;  %s1129_s25 = smov 127   ;;  %v1130_v18 = vmov 0.0   ;;  %vm280_vm0 = vcmask 703488  }
  0x15   :  { %v75_v15 = vld [vmem:[#allocation3 + $0x10] sm:$0xf]  ;;  %690 = vmatprep.mubr.f32.mxu0 %v1130_v18  ;;  %761 = vmatprep.mubr.f32.mxu1 %v1130_v18  ;;  %v522_v19 = vld [vmem:[#allocation3 + $0x24] sm:$0xf]  ;;  %vm217_vm1 = vcmask 719872   ;;  %vm601_vm2 = vcmask 1043456  }
  0x16   :  { %v1065_v16 = vld [vmem:[#allocation3 + $0x10] ss:$0 sps:$4 sm:$0xff]   ;;  %v461_v20 = vld [vmem:[#allocation3 + $0x24] sm:$0xf]  ;;  %vm249_vm3 = vcmask 711680   ;;  %v1131_v59 = vmov 0  }
  0x17   :  { %272 = vrot.lane.b32.xlu0 %v268_v4, %s1122_s19  ;;  %209 = vrot.lane.b32.xlu1 %v268_v4, %s1123_s0  ;;  %v1066_v17 = vld [vmem:[#allocation3 + $0x10] ss:$0 sps:$4 sm:$0xff]   ;;  %v1071_v22 = vld [vmem:[#allocation3 + $0x24] ss:$0 sps:$4 sm:$0xff]   ;;  %vm154_vm4 = vcmask 875520   ;;  %vm186_vm5 = vcmask 867328  }
  0x18   :  { %v400_v24 = vld [vmem:[#allocation3 + $0x24] sm:$0xf]  ;;  %1058 = vset.pattern.permute.xlu0 %v1131_v59  ;;  %vm91_vm6 = vcmask 1031168   ;;  %vm123_vm7 = vcmask 883712   ;;  %vm60_vm8 = vcmask 1039360   ;;  %vm597_vm9 = vcmask 293888  }
  0x19   :  { %v1072_v31 = vld [vmem:[#allocation3 + $0x24] ss:$0 sps:$4 sm:$0xff]  }
  0x1a   :  { %v339_v47 = vld [vmem:[#allocation3 + $0x24] sm:$0xf] }
  0x1b   :  { %211 = vrot.lane.b32.xlu0 %v1158_v1, %s1123_s0  ;;  %213 = vrot.lane.b32.xlu1 %v269_v3, %s1123_s0  ;;  %v1073_v56 = vld [vmem:[#allocation3 + $0x24] ss:$0 sps:$4 sm:$0xff]  }
  0x1f   :  { %215 = vrot.lane.b32.xlu0 %v201_v9, %s1123_s0  ;;  %241 = vrot.lane.b32.xlu1 %v1160_v2, %s1124_s20 }
  0x23   :  { %243 = vrot.lane.b32.xlu0 %v237_v10, %s1124_s20  ;;  %245 = vrot.lane.b32.xlu1 %v1158_v1, %s1124_s20 }
  0x27   :  { %247 = vrot.lane.b32.xlu0 %v1063_v11, %s1124_s20  ;;  %207 = vrot.lane.b32.xlu1 %v1160_v2, %s1123_s0 }
  0x2b   :  { %239 = vrot.lane.b32.xlu0 %v236_v12, %s1124_s20  ;;  %146 = vrot.lane.b32.xlu1 %v268_v4, %s1125_s21 }
  0x2f   :  { %148 = vrot.lane.b32.xlu0 %v1158_v1, %s1125_s21  ;;  %150 = vrot.lane.b32.xlu1 %v269_v3, %s1125_s21 }
  0x33   :  { %152 = vrot.lane.b32.xlu0 %v138_v13, %s1125_s21  ;;  %178 = vrot.lane.b32.xlu1 %v1160_v2, %s1126_s22 }
  0x37   :  { %180 = vrot.lane.b32.xlu0 %v237_v10, %s1126_s22  ;;  %182 = vrot.lane.b32.xlu1 %v1158_v1, %s1126_s22 }
  0x3b   :  { %184 = vrot.lane.b32.xlu0 %v1064_v14, %s1126_s22  ;;  %144 = vrot.lane.b32.xlu1 %v1160_v2, %s1125_s21  ;;  %v591_v14 = vld [vmem:[%s1449_s2] sm:$0xff] }
  0x3f   :  { %176 = vrot.lane.b32.xlu0 %v236_v12, %s1126_s22  ;;  %83 = vrot.lane.b32.xlu1 %v268_v4, %s1127_s23 }
  0x43   :  { %85 = vrot.lane.b32.xlu0 %v1158_v1, %s1127_s23  ;;  %87 = vrot.lane.b32.xlu1 %v269_v3, %s1127_s23 }
  0x47   :  { %89 = vrot.lane.b32.xlu0 %v75_v15, %s1127_s23  ;;  %115 = vrot.lane.b32.xlu1 %v1160_v2, %s1128_s24 }
  0x4b   :  { %117 = vrot.lane.b32.xlu0 %v237_v10, %s1128_s24  ;;  %119 = vrot.lane.b32.xlu1 %v1158_v1, %s1128_s24 }
  0x4f   :  { %121 = vrot.lane.b32.xlu0 %v1065_v16, %s1128_s24  ;;  %81 = vrot.lane.b32.xlu1 %v1160_v2, %s1127_s23 }
  0x53   :  { %113 = vrot.lane.b32.xlu0 %v236_v12, %s1128_s24  ;;  %52 = vrot.lane.b32.xlu1 %v1160_v2, %s1129_s25 }
  0x57   :  { %54 = vrot.lane.b32.xlu0 %v237_v10, %s1129_s25  ;;  %56 = vrot.lane.b32.xlu1 %v1158_v1, %s1129_s25  ;;  %v1074_v10 = vld [vmem:[#allocation3 + $0x24] ss:$0 sps:$4 sm:$0xff]  }
  0x5b   :  { %58 = vrot.lane.b32.xlu0 %v1066_v17, %s1129_s25  ;;  %50 = vrot.lane.b32.xlu1 %v236_v12, %s1129_s25 }
  0x5f   :  { %530 = vrot.lane.b32.xlu0 %v1178_v6, %s1122_s19  ;;  %532 = vrot.lane.b32.xlu1 %v1180_v7, %s1122_s19 }
  0x63   :  { %534 = vrot.lane.b32.xlu0 %v1185_v8, %s1122_s19  ;;  %536 = vrot.lane.b32.xlu1 %v522_v19, %s1122_s19 }
  0x67   :  { %528 = vrot.lane.b32.xlu0 %v1171_v5, %s1122_s19  ;;  %469 = vrot.lane.b32.xlu1 %v1178_v6, %s1123_s0 }
  0x6b   :  { %471 = vrot.lane.b32.xlu0 %v1180_v7, %s1123_s0  ;;  %473 = vrot.lane.b32.xlu1 %v1185_v8, %s1123_s0 }
  0x6f   :  { %475 = vrot.lane.b32.xlu0 %v461_v20, %s1123_s0  ;;  %500 = vrot.lane.b32.xlu1 %v1171_v5, %s1124_s20 }
  0x73   :  { %502 = vrot.lane.b32.xlu0 %v1266_v21, %s1124_s20  ;;  %504 = vrot.lane.b32.xlu1 %v1180_v7, %s1124_s20 }
  0x77   :  { %506 = vrot.lane.b32.xlu0 %v1071_v22, %s1124_s20  ;;  %467 = vrot.lane.b32.xlu1 %v1171_v5, %s1123_s0 }
  0x7b   :  { %498 = vrot.lane.b32.xlu0 %v1274_v23, %s1124_s20  ;;  %408 = vrot.lane.b32.xlu1 %v1178_v6, %s1125_s21 }
  0x7f   :  { %410 = vrot.lane.b32.xlu0 %v1180_v7, %s1125_s21  ;;  %412 = vrot.lane.b32.xlu1 %v1185_v8, %s1125_s21 }
  0x81   :  { %v279_v25 = vpop.permute.xlu1 %278  ;;  %v275_v26 = vpop.permute.xlu0 %274 }
  0x83   :  { %414 = vrot.lane.b32.xlu0 %v400_v24, %s1125_s21  ;;  %439 = vrot.lane.b32.xlu1 %v1171_v5, %s1126_s22 }
  0x85   :  { %v277_v27 = vpop.permute.xlu1 %276  ;;  %v271_v28 = vpop.permute.xlu0 %270 }
  0x86   :  { %v283_v29 = vsel %vm280_vm0, %v275_v26, %v277_v27  ;;  %v284_v30 = vsel %vm280_vm0, %v277_v27, %v279_v25 }
  0x87   :  { %291 = vst [vmem:[#allocation2 + $0x8] sm:$0xf] %v283_v29  ;;  %292 = vst [vmem:[#allocation2 + $0x118] sm:$0xf] %v284_v30  ;;  %441 = vrot.lane.b32.xlu0 %v1266_v21, %s1126_s22  ;;  %443 = vrot.lane.b32.xlu1 %v1180_v7, %s1126_s22 }
  0x89   :  { %v273_v32 = vpop.permute.xlu0 %272  ;;  %v210_v33 = vpop.permute.xlu1 %209 }
  0x8a   :  { %v281_v34 = vsel %vm280_vm0, %v271_v28, %v273_v32  ;;  %v282_v35 = vsel %vm280_vm0, %v273_v32, %v275_v26 }
  0x8b   :  { %289 = vst [vmem:[#allocation2 + $0x128] sm:$0xf] %v281_v34  ;;  %290 = vst [vmem:[#allocation2 + $0xf0] sm:$0xf] %v282_v35  ;;  %445 = vrot.lane.b32.xlu0 %v1072_v31, %s1126_s22  ;;  %406 = vrot.lane.b32.xlu1 %v1171_v5, %s1125_s21 }
  0x8d   :  { %v212_v36 = vpop.permute.xlu0 %211  ;;  %v214_v37 = vpop.permute.xlu1 %213 }
  0x8e   :  { %v219_v38 = vsel %vm217_vm1, %v210_v33, %v212_v36  ;;  %v220_v39 = vsel %vm217_vm1, %v212_v36, %v214_v37  ;;  %v586_v40 = vld [vmem:[#allocation2 + $0x118] sm:$0xf]  ;;  %v585_v41 = vld [vmem:[#allocation2 + $0x8] sm:$0xf] }
  0x8f   :  { %227 = vst [vmem:[#allocation2 + $0x68] sm:$0xf] %v219_v38  ;;  %228 = vst [vmem:[#allocation2 + $0xd0] sm:$0xf] %v220_v39  ;;  %1033 = vmatprep.subr.msk.mxu1 %vm601_vm2, %v586_v40  ;;  %437 = vrot.lane.b32.xlu0 %v1274_v23, %s1126_s22 }
  0x90   :  { %347 = vrot.lane.b32.xlu1 %v1178_v6, %s1127_s23  ;;  %1034 = vmatpush1.msk.msra.mxu1 %vm601_vm2, %v585_v41 }
  0x91   :  { %v216_v42 = vpop.permute.xlu0 %215  ;;  %v242_v43 = vpop.permute.xlu1 %241 }
  0x92   :  { %v221_v44 = vsel %vm217_vm1, %v214_v37, %v216_v42  ;;  %v584_v45 = vld [vmem:[#allocation2 + $0xf0] sm:$0xf]  ;;  %v583_v46 = vld [vmem:[#allocation2 + $0x128] sm:$0xf] }
  0x93   :  { %229 = vst [vmem:[#allocation2 + $0x40] sm:$0xf] %v221_v44  ;;  %1030 = vmatprep.subr.msk.mxu0 %vm601_vm2, %v584_v45  ;;  %349 = vrot.lane.b32.xlu0 %v1180_v7, %s1127_s23 }
  0x94   :  { %351 = vrot.lane.b32.xlu1 %v1185_v8, %s1127_s23  ;;  %1031 = vmatpush1.msk.msra.mxu0 %vm601_vm2, %v583_v46 }
  0x95   :  { %v244_v48 = vpop.permute.xlu0 %243  ;;  %v246_v49 = vpop.permute.xlu1 %245 }
  0x96   :  { %v251_v50 = vsel %vm249_vm3, %v242_v43, %v244_v48  ;;  %v252_v51 = vsel %vm249_vm3, %v244_v48, %v246_v49 }
  0x97   :  { %259 = vst [vmem:[#allocation2 + $0x68] sm:$0xf0] %v251_v50  ;;  %260 = vst [vmem:[#allocation2 + $0xd0] sm:$0xf0] %v252_v51  ;;  %353 = vrot.lane.b32.xlu0 %v339_v47, %s1127_s23 }
  0x98   :  { %378 = vrot.lane.b32.xlu1 %v1171_v5, %s1128_s24 }
  0x99   :  { %v248_v52 = vpop.permute.xlu0 %247  ;;  %v208_v53 = vpop.permute.xlu1 %207 }
  0x9a   :  { %v253_v54 = vsel %vm249_vm3, %v246_v49, %v248_v52  ;;  %v218_v55 = vsel %vm217_vm1, %v208_v53, %v210_v33 }
  0x9b   :  { %261 = vst [vmem:[#allocation2 + $0x40] sm:$0xf0] %v253_v54  ;;  %226 = vst [vmem:[#allocation2 + $0x18] sm:$0xf] %v218_v55  ;;  %380 = vrot.lane.b32.xlu0 %v1266_v21, %s1128_s24 }
  0x9c   :  { %382 = vrot.lane.b32.xlu1 %v1180_v7, %s1128_s24 }
  0x9d   :  { %v240_v57 = vpop.permute.xlu0 %239  ;;  %v147_v58 = vpop.permute.xlu1 %146 }
  0x9e   :  { %v250_v60 = vsel %vm249_vm3, %v240_v57, %v242_v43  ;;  %v576_v61 = vld [vmem:[#allocation2 + $0x68] sm:$0xff]  ;;  %v577_v3 = vld [vmem:[#allocation2 + $0xd0] sm:$0xff] }
  0x9f   :  { %258 = vst [vmem:[#allocation2 + $0x18] sm:$0xf0] %v250_v60  ;;  %650 = vmatprep.subr.mxu0 %v576_v61  ;;  %384 = vrot.lane.b32.xlu0 %v1073_v56, %s1128_s24 }
  0xa0   :  { %345 = vrot.lane.b32.xlu1 %v1171_v5, %s1127_s23 }
  0xa1   :  { %v149_v62 = vpop.permute.xlu0 %148  ;;  %v151_v63 = vpop.permute.xlu1 %150 }
  0xa2   :  { %v156_v0 = vsel %vm154_vm4, %v147_v58, %v149_v62  ;;  %v157_v1 = vsel %vm154_vm4, %v149_v62, %v151_v63  ;;  %v578_v2 = vld [vmem:[#allocation2 + $0x40] sm:$0xff] }
  0xa3   :  { %164 = vst [vmem:[#allocation2 + $0xe8] sm:$0xf] %v156_v0  ;;  %165 = vst [vmem:[#allocation2 + $0x138] sm:$0xf] %v157_v1  ;;  %721 = vmatprep.subr.mxu1 %v578_v2  ;;  %376 = vrot.lane.b32.xlu0 %v1274_v23, %s1128_s24  ;;  %v1369_v62 = vld [vmem:[%s1448_s1] sm:$0xff]  ;;  %s1132_s1 = smov [#allocation6]  }
  0xa4   :  { %317 = vrot.lane.b32.xlu1 %v1171_v5, %s1129_s25  ;;  %722 = vmatpush1.msra.mxu1 %v577_v3  ;;  %s1018_s29 = sshll.u32 %s1132_s1, 4  ;;  %s1019_s29 = int_to_ptr.vmem [resolvable:$true] %s1018_s29 }
  0xa5   :  { %v153_v4 = vpop.permute.xlu0 %152  ;;  %v179_v6 = vpop.permute.xlu1 %178  ;;  %s1095_s30 = scalar_lea.vmem %s1019_s29, 768  ;;  %p1100_p6 = scmp.lt.s32.totalorder %s1019_s29, %s1019_s29 }
  0xa6   :  { %v158_v8 = vsel %vm154_vm4, %v151_v63, %v153_v4  ;;  %v575_v9 = vld [vmem:[#allocation2 + $0x18] sm:$0xff]  ;;  %p1096_p5 = scmp.ne.s32.totalorder %s1019_s29, %s1095_s30  ;;  %p1101_p7 = scmp.lt.s32.totalorder %s1095_s30, %s1095_s30 }
  0xa7   :  { %166 = vst [vmem:[#allocation2 + $0xb0] sm:$0xf] %v158_v8  ;;  %651 = vmatpush1.msra.mxu0 %v575_v9  ;;  %319 = vrot.lane.b32.xlu0 %v1266_v21, %s1129_s25 }
  0xa8   :  { %321 = vrot.lane.b32.xlu1 %v1180_v7, %s1129_s25  ;;  %p1102_p8 = por %p1101_p7, %p1100_p6 }
  0xa9   :  { %v181_v11 = vpop.permute.xlu0 %180  ;;  %v183_v12 = vpop.permute.xlu1 %182 }
  0xaa   :  { %v188_v5 = vsel %vm186_vm5, %v179_v6, %v181_v11  ;;  %v189_v13 = vsel %vm186_vm5, %v181_v11, %v183_v12  ;;  %p1103_p9 = pnand %p1102_p8, %p1096_p5 }
  0xab   :  { %196 = vst [vmem:[#allocation2 + $0xe8] sm:$0xf0] %v188_v5  ;;  %197 = vst [vmem:[#allocation2 + $0x138] sm:$0xf0] %v189_v13  ;;  %323 = vrot.lane.b32.xlu0 %v1074_v10, %s1129_s25 }
  0xac   :  { %315 = vrot.lane.b32.xlu1 %v1274_v23, %s1129_s25 }
  0xad   :  { %v185_v15 = vpop.permute.xlu0 %184  ;;  %v145_v16 = vpop.permute.xlu1 %144 }
  0xae   :  { %v190_v7 = vsel %vm186_vm5, %v183_v12, %v185_v15  ;;  %v155_v17 = vsel %vm154_vm4, %v145_v16, %v147_v58 }
  0xaf   :  { %198 = vst [vmem:[#allocation2 + $0xb0] sm:$0xf0] %v190_v7  ;;  %163 = vst [vmem:[#allocation2 + $0x100] sm:$0xf] %v155_v17  ;;  %594 = vperm.xlu0 %1058, %v591_v14  }
  0xb1   :  { %v177_v19 = vpop.permute.xlu0 %176  ;;  %v84_v20 = vpop.permute.xlu1 %83 }
  0xb2   :  { %v187_v21 = vsel %vm186_vm5, %v177_v19, %v179_v6  ;;  %v568_v22 = vld [vmem:[#allocation2 + $0xe8] sm:$0xff]  ;;  %v569_v28 = vld [vmem:[#allocation2 + $0x138] sm:$0xff] }
  0xb3   :  { %195 = vst [vmem:[#allocation2 + $0x100] sm:$0xf0] %v187_v21  ;;  %652 = vmatprep.subr.mxu0 %v568_v22 }
  0xb5   :  { %v86_v23 = vpop.permute.xlu0 %85  ;;  %v88_v24 = vpop.permute.xlu1 %87 }
  0xb6   :  { %v93_v25 = vsel %vm91_vm6, %v84_v20, %v86_v23  ;;  %v94_v26 = vsel %vm91_vm6, %v86_v23, %v88_v24  ;;  %v570_v27 = vld [vmem:[#allocation2 + $0xb0] sm:$0xff] }
  0xb7   :  { %101 = vst [vmem:[#allocation2 + $0x58] sm:$0xf] %v93_v25  ;;  %102 = vst [vmem:[#allocation2 + $0xb8] sm:$0xf] %v94_v26  ;;  %723 = vmatprep.subr.mxu1 %v570_v27 }
  0xb8   :  { %724 = vmatpush1.msra.mxu1 %v569_v28 }
  0xb9   :  { %v90_v29 = vpop.permute.xlu0 %89  ;;  %v116_v30 = vpop.permute.xlu1 %115 }
  0xba   :  { %v95_v31 = vsel %vm91_vm6, %v88_v24, %v90_v29  ;;  %v567_v32 = vld [vmem:[#allocation2 + $0x100] sm:$0xff] }
  0xbb   :  { %103 = vst [vmem:[#allocation2 + $0xe0] sm:$0xf] %v95_v31  ;;  %653 = vmatpush1.msra.mxu0 %v567_v32 }
  0xbd   :  { %v118_v33 = vpop.permute.xlu0 %117  ;;  %v120_v34 = vpop.permute.xlu1 %119 }
  0xbe   :  { %v125_v35 = vsel %vm123_vm7, %v116_v30, %v118_v33  ;;  %v126_v36 = vsel %vm123_vm7, %v118_v33, %v120_v34 }
  0xbf   :  { %133 = vst [vmem:[#allocation2 + $0x58] sm:$0xf0] %v125_v35  ;;  %134 = vst [vmem:[#allocation2 + $0xb8] sm:$0xf0] %v126_v36 }
  0xc1   :  { %v122_v37 = vpop.permute.xlu0 %121  ;;  %v82_v38 = vpop.permute.xlu1 %81 }
  0xc2   :  { %v127_v39 = vsel %vm123_vm7, %v120_v34, %v122_v37  ;;  %v92_v40 = vsel %vm91_vm6, %v82_v38, %v84_v20 }
  0xc3   :  { %135 = vst [vmem:[#allocation2 + $0xe0] sm:$0xf0] %v127_v39  ;;  %100 = vst [vmem:[#allocation2 + $0x120] sm:$0xf] %v92_v40 }
  0xc5   :  { %v114_v41 = vpop.permute.xlu0 %113  ;;  %v53_v42 = vpop.permute.xlu1 %52 }
  0xc6   :  { %v124_v43 = vsel %vm123_vm7, %v114_v41, %v116_v30  ;;  %v560_v44 = vld [vmem:[#allocation2 + $0x58] sm:$0xff] }
  0xc7   :  { %132 = vst [vmem:[#allocation2 + $0x120] sm:$0xf0] %v124_v43  ;;  %654 = vmatprep.subr.mxu0 %v560_v44  ;;  %v561_v50 = vld [vmem:[#allocation2 + $0xb8] sm:$0xff] }
  0xc9   :  { %v55_v45 = vpop.permute.xlu0 %54  ;;  %v57_v46 = vpop.permute.xlu1 %56 }
  0xca   :  { %v62_v47 = vsel %vm60_vm8, %v53_v42, %v55_v45  ;;  %v63_v48 = vsel %vm60_vm8, %v55_v45, %v57_v46  ;;  %v562_v49 = vld [vmem:[#allocation2 + $0xe0] sm:$0xff] }
  0xcb   :  { %70 = vst [vmem:[#allocation2 + $0x70] sm:$0xf0] %v62_v47  ;;  %71 = vst [vmem:[#allocation2 + $0x10] sm:$0xf0] %v63_v48  ;;  %725 = vmatprep.subr.mxu1 %v562_v49 }
  0xcc   :  { %726 = vmatpush1.msra.mxu1 %v561_v50 }
  0xcd   :  { %v59_v51 = vpop.permute.xlu0 %58  ;;  %v51_v52 = vpop.permute.xlu1 %50 }
  0xce   :  { %v64_v53 = vsel %vm60_vm8, %v57_v46, %v59_v51  ;;  %v61_v54 = vsel %vm60_vm8, %v51_v52, %v53_v42  ;;  %v559_v55 = vld [vmem:[#allocation2 + $0x120] sm:$0xff] }
  0xcf   :  { %72 = vst [vmem:[#allocation2 + $0x88] sm:$0xf0] %v64_v53  ;;  %69 = vst [vmem:[#allocation2 + $0x30] sm:$0xf0] %v61_v54  ;;  %655 = vmatpush1.msra.mxu0 %v559_v55 }
  0xd1   :  { %v531_v56 = vpop.permute.xlu0 %530  ;;  %v533_v57 = vpop.permute.xlu1 %532 }
  0xd2   :  { %v539_v58 = vsel %vm280_vm0, %v531_v56, %v533_v57  ;;  %v552_v59 = vld [vmem:[#allocation2 + $0x70] sm:$0xff] }
  0xd3   :  { %547 = vst [vmem:[#allocation2] sm:$0xf] %v539_v58  ;;  %656 = vmatprep.subr.mxu0 %v552_v59  ;;  %v553_v3 = vld [vmem:[#allocation2 + $0x10] sm:$0xff] }
  0xd5   :  { %v535_v60 = vpop.permute.xlu0 %534  ;;  %v537_v61 = vpop.permute.xlu1 %536 }
  0xd6   :  { %v540_v63 = vsel %vm280_vm0, %v533_v57, %v535_v60  ;;  %v541_v0 = vsel %vm280_vm0, %v535_v60, %v537_v61  ;;  %v551_v1 = vld [vmem:[#allocation2 + $0x30] sm:$0xff]  ;;  %v554_v2 = vld [vmem:[#allocation2 + $0x88] sm:$0xff] }
  0xd7   :  { %548 = vst [vmem:[#allocation2 + $0x38] sm:$0xf] %v540_v63  ;;  %549 = vst [vmem:[#allocation2 + $0xc0] sm:$0xf] %v541_v0  ;;  %657 = vmatpush1.msra.mxu0 %v551_v1  ;;  %727 = vmatprep.subr.mxu1 %v554_v2 }
  0xd8   :  { %1032 = vmatmul.mubr.msk.f32.vlgmr.msra.gmra.mxu0 %vm597_vm9, %v1369_v62  ;;  %728 = vmatpush1.msra.mxu1 %v553_v3 }
  0xd9   :  { %v529_v4 = vpop.permute.xlu0 %528  ;;  %v470_v6 = vpop.permute.xlu1 %469  ;;  %1035 = vmatmul.mubr.msk.f32.vlgmr.msra.gmra.mxu1 %vm597_vm9, %v1369_v62  ;;  %832 = vmatprep.mubr.f32.mxu0 %v1130_v18 }
  0xda   :  { %v538_v8 = vsel %vm280_vm0, %v529_v4, %v531_v56  ;;  %v588_v9 = vld [vmem:[#allocation2] sm:$0xf]  ;;  %903 = vmatprep.mubr.f32.mxu1 %v1130_v18 }
  0xdb   :  { %546 = vst [vmem:[#allocation2 + $0x48] sm:$0xf] %v538_v8  ;;  %1036 = vmatprep.subr.msk.mxu0 %vm601_vm2, %v588_v9 }
  0xdd   :  { %v472_v10 = vpop.permute.xlu0 %471  ;;  %v474_v11 = vpop.permute.xlu1 %473 }
  0xde   :  { %v478_v12 = vsel %vm217_vm1, %v470_v6, %v472_v10  ;;  %v479_v5 = vsel %vm217_vm1, %v472_v10, %v474_v11  ;;  %v590_v13 = vld [vmem:[#allocation2 + $0xc0] sm:$0xf]  ;;  %v589_v14 = vld [vmem:[#allocation2 + $0x38] sm:$0xf] }
  0xdf   :  { %486 = vst [vmem:[#allocation2 + $0xd8] sm:$0xf] %v478_v12  ;;  %487 = vst [vmem:[#allocation2 + $0x50] sm:$0xf] %v479_v5  ;;  %1039 = vmatprep.subr.msk.mxu1 %vm601_vm2, %v590_v13 }
  0xe0   :  { %1040 = vmatpush1.msk.msra.mxu1 %vm601_vm2, %v589_v14 }
  0xe1   :  { %v476_v15 = vpop.permute.xlu0 %475  ;;  %v501_v16 = vpop.permute.xlu1 %500 }
  0xe2   :  { %v480_v18 = vsel %vm217_vm1, %v474_v11, %v476_v15  ;;  %v587_v7 = vld [vmem:[#allocation2 + $0x48] sm:$0xf] }
  0xe3   :  { %488 = vst [vmem:[#allocation2 + $0x80] sm:$0xf] %v480_v18  ;;  %1037 = vmatpush1.msk.msra.mxu0 %vm601_vm2, %v587_v7 }
  0xe5   :  { %v503_v17 = vpop.permute.xlu0 %502  ;;  %v505_v19 = vpop.permute.xlu1 %504 }
  0xe6   :  { %v509_v20 = vsel %vm249_vm3, %v501_v16, %v503_v17  ;;  %v510_v21 = vsel %vm249_vm3, %v503_v17, %v505_v19 }
  0xe7   :  { %517 = vst [vmem:[#allocation2 + $0xd8] sm:$0xf0] %v509_v20  ;;  %518 = vst [vmem:[#allocation2 + $0x50] sm:$0xf0] %v510_v21 }
  0xe9   :  { %v507_v22 = vpop.permute.xlu0 %506  ;;  %v468_v23 = vpop.permute.xlu1 %467 }
  0xea   :  { %v511_v24 = vsel %vm249_vm3, %v505_v19, %v507_v22  ;;  %v477_v25 = vsel %vm217_vm1, %v468_v23, %v470_v6 }
  0xeb   :  { %519 = vst [vmem:[#allocation2 + $0x80] sm:$0xf0] %v511_v24  ;;  %485 = vst [vmem:[#allocation2 + $0x98] sm:$0xf] %v477_v25 }
  0xed   :  { %v499_v26 = vpop.permute.xlu0 %498  ;;  %v409_v27 = vpop.permute.xlu1 %408 }
  0xee   :  { %v508_v28 = vsel %vm249_vm3, %v499_v26, %v501_v16  ;;  %v580_v29 = vld [vmem:[#allocation2 + $0xd8] sm:$0xff]  ;;  %v581_v35 = vld [vmem:[#allocation2 + $0x50] sm:$0xff] }
  0xef   :  { %516 = vst [vmem:[#allocation2 + $0x98] sm:$0xf0] %v508_v28  ;;  %792 = vmatprep.subr.mxu0 %v580_v29 }
  0xf1   :  { %v411_v30 = vpop.permute.xlu0 %410  ;;  %v413_v31 = vpop.permute.xlu1 %412 }
  0xf2   :  { %v417_v32 = vsel %vm154_vm4, %v409_v27, %v411_v30  ;;  %v418_v33 = vsel %vm154_vm4, %v411_v30, %v413_v31  ;;  %v582_v34 = vld [vmem:[#allocation2 + $0x80] sm:$0xff] }
  0xf3   :  { %425 = vst [vmem:[#allocation2 + $0x130] sm:$0xf] %v417_v32  ;;  %426 = vst [vmem:[#allocation2 + $0x90] sm:$0xf] %v418_v33  ;;  %863 = vmatprep.subr.mxu1 %v582_v34 }
  0xf4   :  { %864 = vmatpush1.msra.mxu1 %v581_v35 }
  0xf5   :  { %v415_v36 = vpop.permute.xlu0 %414  ;;  %v440_v37 = vpop.permute.xlu1 %439 }
  0xf6   :  { %v419_v38 = vsel %vm154_vm4, %v413_v31, %v415_v36  ;;  %v579_v39 = vld [vmem:[#allocation2 + $0x98] sm:$0xff] }
  0xf7   :  { %427 = vst [vmem:[#allocation2 + $0xa8] sm:$0xf] %v419_v38  ;;  %793 = vmatpush1.msra.mxu0 %v579_v39 }
  0xf9   :  { %v442_v40 = vpop.permute.xlu0 %441  ;;  %v444_v41 = vpop.permute.xlu1 %443 }
  0xfa   :  { %v448_v42 = vsel %vm186_vm5, %v440_v37, %v442_v40  ;;  %v449_v43 = vsel %vm186_vm5, %v442_v40, %v444_v41 }
  0xfb   :  { %456 = vst [vmem:[#allocation2 + $0x130] sm:$0xf0] %v448_v42  ;;  %457 = vst [vmem:[#allocation2 + $0x90] sm:$0xf0] %v449_v43 }
  0xfd   :  { %v446_v44 = vpop.permute.xlu0 %445  ;;  %v407_v45 = vpop.permute.xlu1 %406 }
  0xfe   :  { %v450_v46 = vsel %vm186_vm5, %v444_v41, %v446_v44  ;;  %v416_v47 = vsel %vm154_vm4, %v407_v45, %v409_v27 }
  0xff   :  { %458 = vst [vmem:[#allocation2 + $0xa8] sm:$0xf0] %v450_v46  ;;  %424 = vst [vmem:[#allocation2 + $0xc8] sm:$0xf] %v416_v47 }
 0x101   :  { %v438_v48 = vpop.permute.xlu0 %437 }
 0x102   :  { %v447_v49 = vsel %vm186_vm5, %v438_v48, %v440_v37  ;;  %v348_v50 = vpop.permute.xlu1 %347  ;;  %v572_v51 = vld [vmem:[#allocation2 + $0x130] sm:$0xff] }
 0x103   :  { %455 = vst [vmem:[#allocation2 + $0xc8] sm:$0xf0] %v447_v49  ;;  %794 = vmatprep.subr.mxu0 %v572_v51  ;;  %v573_v57 = vld [vmem:[#allocation2 + $0x90] sm:$0xff] }
 0x105   :  { %v350_v52 = vpop.permute.xlu0 %349 }
 0x106   :  { %v356_v53 = vsel %vm91_vm6, %v348_v50, %v350_v52  ;;  %v352_v54 = vpop.permute.xlu1 %351  ;;  %v574_v55 = vld [vmem:[#allocation2 + $0xa8] sm:$0xff] }
 0x107   :  { %364 = vst [vmem:[#allocation2 + $0xf8] sm:$0xf] %v356_v53  ;;  %v357_v56 = vsel %vm91_vm6, %v350_v52, %v352_v54  ;;  %865 = vmatprep.subr.mxu1 %v574_v55 }
 0x108   :  { %365 = vst [vmem:[#allocation2 + $0x78] sm:$0xf] %v357_v56  ;;  %866 = vmatpush1.msra.mxu1 %v573_v57 }
 0x109   :  { %v354_v58 = vpop.permute.xlu0 %353 }
 0x10a   :  { %v358_v59 = vsel %vm91_vm6, %v352_v54, %v354_v58  ;;  %v379_v60 = vpop.permute.xlu1 %378  ;;  %v571_v61 = vld [vmem:[#allocation2 + $0xc8] sm:$0xff] }
 0x10b   :  { %366 = vst [vmem:[#allocation2 + $0x20] sm:$0xf] %v358_v59  ;;  %795 = vmatpush1.msra.mxu0 %v571_v61 }
 0x10d   :  { %v381_v63 = vpop.permute.xlu0 %380 }
 0x10e   :  { %v387_v0 = vsel %vm123_vm7, %v379_v60, %v381_v63  ;;  %v383_v1 = vpop.permute.xlu1 %382 }
 0x10f   :  { %395 = vst [vmem:[#allocation2 + $0xf8] sm:$0xf0] %v387_v0  ;;  %v388_v2 = vsel %vm123_vm7, %v381_v63, %v383_v1 }
 0x110   :  { %396 = vst [vmem:[#allocation2 + $0x78] sm:$0xf0] %v388_v2 }
 0x111   :  { %v385_v3 = vpop.permute.xlu0 %384 }
 0x112   :  { %v389_v4 = vsel %vm123_vm7, %v383_v1, %v385_v3  ;;  %v346_v6 = vpop.permute.xlu1 %345 }
 0x113   :  { %397 = vst [vmem:[#allocation2 + $0x20] sm:$0xf0] %v389_v4  ;;  %v355_v8 = vsel %vm91_vm6, %v346_v6, %v348_v50 }
 0x114   :  { %363 = vst [vmem:[#allocation2 + $0x60] sm:$0xf] %v355_v8 }
 0x115   :  { %v377_v9 = vpop.permute.xlu0 %376 }
 0x116   :  { %v386_v10 = vsel %vm123_vm7, %v377_v9, %v379_v60  ;;  %v318_v11 = vpop.permute.xlu1 %317  ;;  %v564_v12 = vld [vmem:[#allocation2 + $0xf8] sm:$0xff] }
 0x117   :  { %394 = vst [vmem:[#allocation2 + $0x60] sm:$0xf0] %v386_v10  ;;  %796 = vmatprep.subr.mxu0 %v564_v12  ;;  %v565_v18 = vld [vmem:[#allocation2 + $0x78] sm:$0xff] }
 0x119   :  { %v320_v5 = vpop.permute.xlu0 %319 }
 0x11a   :  { %v326_v13 = vsel %vm60_vm8, %v318_v11, %v320_v5  ;;  %v322_v14 = vpop.permute.xlu1 %321  ;;  %v566_v15 = vld [vmem:[#allocation2 + $0x20] sm:$0xff] }
 0x11b   :  { %334 = vst [vmem:[#allocation2 + $0x110] sm:$0xf0] %v326_v13  ;;  %v327_v16 = vsel %vm60_vm8, %v320_v5, %v322_v14  ;;  %867 = vmatprep.subr.mxu1 %v566_v15 }
 0x11c   :  { %335 = vst [vmem:[#allocation2 + $0xa0] sm:$0xf0] %v327_v16  ;;  %868 = vmatpush1.msra.mxu1 %v565_v18 }
 0x11d   :  { %v324_v7 = vpop.permute.xlu0 %323 }
 0x11e   :  { %v328_v17 = vsel %vm60_vm8, %v322_v14, %v324_v7  ;;  %v316_v19 = vpop.permute.xlu1 %315  ;;  %v563_v20 = vld [vmem:[#allocation2 + $0x60] sm:$0xff] }
 0x11f   :  { %336 = vst [vmem:[#allocation2 + $0x108] sm:$0xf0] %v328_v17  ;;  %v325_v21 = vsel %vm60_vm8, %v316_v19, %v318_v11  ;;  %797 = vmatpush1.msra.mxu0 %v563_v20 }
 0x120   :  { %333 = vst [vmem:[#allocation2 + $0x28] sm:$0xf0] %v325_v21 }
 0x122   :  { %v556_v22 = vld [vmem:[#allocation2 + $0x110] sm:$0xff] }
 0x123   :  { %798 = vmatprep.subr.mxu0 %v556_v22  ;;  %v557_v25 = vld [vmem:[#allocation2 + $0xa0] sm:$0xff] }
 0x126   :  { %v558_v23 = vld [vmem:[#allocation2 + $0x108] sm:$0xff] }
 0x127   :  { %v555_v24 = vld [vmem:[#allocation2 + $0x28] sm:$0xff]  ;;  %869 = vmatprep.subr.mxu1 %v558_v23 }
 0x128   :  { %799 = vmatpush1.msra.mxu0 %v555_v24  ;;  %870 = vmatpush1.msra.mxu1 %v557_v25 }
 0x129   :  { %1038 = vmatmul.mubr.msk.f32.vlgmr.msra.gmra.mxu0 %vm597_vm9, %v1369_v62  ;;  %1041 = vmatmul.mubr.msk.f32.vlgmr.msra.gmra.mxu1 %vm597_vm9, %v1369_v62 }
 0x12a   :  { %v595_v26 = vpop.permute.xlu0 %594 }
 0x198   :  { %v692_v27 = vpop.f32.mrf.mxu0 }
 0x199   :  { %v693_v28 = vadd.f32 %v692_v27, %v595_v26  ;;  %v763_v29 = vpop.f32.mrf.mxu1 }
 0x19a   :  { %v694_v30 = vpop.f32.mrf.mxu0  ;;  %v764_v31 = vadd.f32 %v763_v29, %v595_v26 }
 0x19b   :  { %v910_v32 = vmax.f32 %v693_v28, 0.0  ;;  %v695_v33 = vadd.f32 %v694_v30, %v595_v26  ;;  %v765_v34 = vpop.f32.mrf.mxu1 }
 0x19c   :  { %v912_v35 = vmax.f32 %v764_v31, 0.0  ;;  %v766_v37 = vadd.f32 %v765_v34, %v595_v26 }
 0x19d   :  { %v911_v36 = vmax.f32 %v695_v33, 0.0  ;;  %922 = vrot.lane.b32.xlu1 %v910_v32, %s1129_s25 }
 0x19e   :  { %926 = vrot.lane.b32.xlu0 %v912_v35, %s1129_s25  ;;  %v913_v38 = vmax.f32 %v766_v37, 0.0 }
 0x1a1   :  { %924 = vrot.lane.b32.xlu1 %v911_v36, %s1129_s25 }
 0x1a5   :  { %928 = vrot.lane.b32.xlu1 %v913_v38, %s1129_s25 }
 0x1e9   :  { %v834_v62 = vpop.f32.mrf.mxu0  ;;  %v905_v39 = vpop.f32.mrf.mxu1 }
 0x1ea   :  { %v835_v40 = vadd.f32 %v834_v62, %v595_v26  ;;  %v906_v44 = vadd.f32 %v905_v39, %v595_v26 }
 0x1eb   :  { %v836_v41 = vpop.f32.mrf.mxu0  ;;  %v907_v42 = vpop.f32.mrf.mxu1 }
 0x1ec   :  { %v914_v43 = vmax.f32 %v835_v40, 0.0  ;;  %v837_v45 = vadd.f32 %v836_v41, %v595_v26  ;;  %v908_v47 = vadd.f32 %v907_v42, %v595_v26  ;;  %v916_v48 = vmax.f32 %v906_v44, 0.0 }
 0x1ee   :  { %v915_v46 = vmax.f32 %v837_v45, 0.0  ;;  %969 = vrot.lane.b32.xlu0 %v914_v43, %s1129_s25  ;;  %v917_v49 = vmax.f32 %v908_v47, 0.0 }
 0x1f0   :  { %971 = vrot.lane.b32.xlu1 %v915_v46, %s1129_s25 }
 0x1f2   :  { %973 = vrot.lane.b32.xlu0 %v916_v48, %s1129_s25 }
 0x1f4   :  { %975 = vrot.lane.b32.xlu1 %v917_v49, %s1129_s25 }
 0x20f   :  { %v923_v50 = vpop.permute.xlu1 %922 }
 0x210   :  { %v927_v54 = vpop.permute.xlu0 %926 }
 0x213   :  { %v925_v51 = vpop.permute.xlu1 %924 }
 0x214   :  { %v930_v52 = vsel %vm60_vm8, %v923_v50, %v925_v51  ;;  %v931_v58 = vsel %vm60_vm8, %v925_v51, %v927_v54 }
 0x215   :  { %v936_v53 = vmax.f32 %v910_v32, %v930_v52  ;;  %v937_v60 = vmax.f32 %v911_v36, %v931_v58 }
 0x217   :  { %945 = vrot.lane.b32.xlu0 %v936_v53, %s1128_s24  ;;  %v929_v55 = vpop.permute.xlu1 %928 }
 0x218   :  { %v932_v56 = vsel %vm60_vm8, %v927_v54, %v929_v55  ;;  %v940_v57 = vmax.f32 %v913_v38, %v929_v55 }
 0x219   :  { %v938_v59 = vmax.f32 %v912_v35, %v932_v56 }
 0x21a   :  { %951 = vrot.lane.b32.xlu1 %v940_v57, %s1128_s24 }
 0x21b   :  { %949 = vrot.lane.b32.xlu0 %v938_v59, %s1128_s24 }
 0x21e   :  { %947 = vrot.lane.b32.xlu1 %v937_v60, %s1128_s24 }
 0x260   :  { %v970_v61 = vpop.permute.xlu0 %969 }
 0x262   :  { %v972_v63 = vpop.permute.xlu1 %971 }
 0x263   :  { %v977_v0 = vsel %vm60_vm8, %v970_v61, %v972_v63 }
 0x264   :  { %v983_v1 = vmax.f32 %v914_v43, %v977_v0  ;;  %v974_v2 = vpop.permute.xlu0 %973 }
 0x265   :  { %v978_v3 = vsel %vm60_vm8, %v972_v63, %v974_v2 }
 0x266   :  { %v984_v4 = vmax.f32 %v915_v46, %v978_v3  ;;  %992 = vrot.lane.b32.xlu0 %v983_v1, %s1128_s24  ;;  %v976_v6 = vpop.permute.xlu1 %975 }
 0x267   :  { %v979_v8 = vsel %vm60_vm8, %v974_v2, %v976_v6  ;;  %v987_v10 = vmax.f32 %v917_v49, %v976_v6 }
 0x268   :  { %v985_v9 = vmax.f32 %v916_v48, %v979_v8  ;;  %994 = vrot.lane.b32.xlu1 %v984_v4, %s1128_s24 }
 0x26a   :  { %996 = vrot.lane.b32.xlu0 %v985_v9, %s1128_s24 }
 0x26c   :  { %998 = vrot.lane.b32.xlu1 %v987_v10, %s1128_s24 }
 0x289   :  { %v946_v11 = vpop.permute.xlu0 %945 }
 0x28c   :  { %v952_v12 = vpop.permute.xlu1 %951 }
 0x28d   :  { %v950_v5 = vpop.permute.xlu0 %949 }
 0x28e   :  { %v955_v13 = vsel %vm123_vm7, %v950_v5, %v952_v12 }
 0x28f   :  { %v961_v14 = vmax.f32 %v938_v59, %v955_v13 }
 0x290   :  { %v948_v15 = vpop.permute.xlu1 %947 }
 0x291   :  { %964 = vst [vmem:[#allocation6 + $0x10] sm:$0xff] %v961_v14  ;;  %v953_v16 = vsel %vm123_vm7, %v946_v11, %v948_v15  ;;  %v954_v18 = vsel %vm123_vm7, %v948_v15, %v950_v5 }
 0x292   :  { %v959_v7 = vmax.f32 %v936_v53, %v953_v16  ;;  %v960_v17 = vmax.f32 %v937_v60, %v954_v18 }
 0x294   :  { %962 = vst [vmem:[#allocation6] sm:$0xff] %v959_v7  ;;  %963 = vst [vmem:[#allocation6 + $0x8] sm:$0xff] %v960_v17 }
 0x2d8   :  { %v993_v19 = vpop.permute.xlu0 %992 }
 0x2da   :  { %v995_v20 = vpop.permute.xlu1 %994 }
 0x2db   :  { %v1000_v21 = vsel %vm123_vm7, %v993_v19, %v995_v20 }
 0x2dc   :  { %v1006_v22 = vmax.f32 %v983_v1, %v1000_v21  ;;  %v997_v23 = vpop.permute.xlu0 %996 }
 0x2dd   :  { %v1001_v24 = vsel %vm123_vm7, %v995_v20, %v997_v23 }
 0x2de   :  { %1010 = vst [vmem:[#allocation6 + $0x18] sm:$0xff] %v1006_v22  ;;  %v1007_v25 = vmax.f32 %v984_v4, %v1001_v24  ;;  %v999_v26 = vpop.permute.xlu1 %998 }
 0x2df   :  { %v1002_v27 = vsel %vm123_vm7, %v997_v23, %v999_v26 }
 0x2e0   :  { %1011 = vst [vmem:[#allocation6 + $0x20] sm:$0xff] %v1007_v25  ;;  %v1008_v28 = vmax.f32 %v985_v9, %v1002_v27 }
 0x2e2   :  { %1012 = vst [vmem:[#allocation6 + $0x28] sm:$0xff] %v1008_v28 }
 0x2e3   :  { %1106 = shalt.err (!%p1103_p9)
}
 0x2e4   :  { %s1133_s4 = smov 384   ;;  %s1134_s5 = smov 24  }
 0x2e5   :  { %1024 = dma.vmem_to_hbm [thread:$0]  %s1019_s29, 768, %s1450_s3, [#allocation5], %s1133_s4, %s1133_s4, %s1134_s5  }
 0x2e6   :  { %1117 = dma.done.wait [#allocation5], 768  }
 0x2e7   :  { %1118 = vsyncadd [#allocation5], 4294966528 }
 0x2e8   :  { %1028 = vsyncpa [#allocation4], 1 }
 0x2e9   :  { %1029 = vsyncpa [#allocation5], 1 }

</bundles_post_ra>
